<compile_context>
chip_gen: v7x
topology: tpu7x:2x2x1
jax: 0.10.0
libtpu: 0.0.40
codegen_flags: <defaults>
</compile_context>

<pallas_src>
import functools

import jax
import jax.numpy as jnp
from jax.experimental import pallas as pl
from jax.experimental.pallas import tpu as pltpu


def _round_up(n: int, m: int) -> int:
    return ((n + m - 1) // m) * m


def dpolicy_kernel(xt_ref, w1t_ref, b1_ref, w2t_ref, b2_ref, ot_ref):
    # x = x.type(torch.float32)
    xt = xt_ref[...].astype(jnp.float32)                       # (in_dim, TILE_B)
    # fc[0]: Linear(in_dim -> hidden), feature-major: (hp, in_dim) @ (in_dim, TB)
    h = jnp.dot(w1t_ref[...], xt, preferred_element_type=jnp.float32) + b1_ref[...]
    # fc[1]: ReLU
    h = jnp.maximum(h, 0.0)
    # fc[2]: Linear(hidden -> out_dim): (out_dim, hp) @ (hp, TB) -> (out_dim, TB)
    # Last dim = TILE_B (multiple of 128) -> lane-dense, unmasked stores.
    ot_ref[...] = (
        jnp.dot(w2t_ref[...], h, preferred_element_type=jnp.float32) + b2_ref[...]
    )


@functools.partial(jax.jit, static_argnames=("tile_b",))
def dpolicy_net(x, w1, b1, w2, b2, *, tile_b=2048):
    """Forward pass of DPolicyNet.

    x : (B, input_dim)       any float dtype (cast to f32 like the module)
    w1: (input_dim, hidden)  hidden = 100
    b1: (hidden,)
    w2: (hidden, output_dim)
    b2: (output_dim,)
    returns (B, output_dim) float32
    """
    B, in_dim = x.shape
    hidden = w1.shape[1]
    out_dim = w2.shape[1]

    # Lane-align the hidden dim and the batch tile.
    hp = _round_up(hidden, 128)
    tb = max(128, min(_round_up(tile_b, 128), _round_up(B, 128)))
    Bp = _round_up(B, tb)

    # Zero-pad hidden 100 -> 128 (exact w.r.t. the original module).
    w1p = jnp.pad(w1, ((0, 0), (0, hp - hidden)))
    b1p = jnp.pad(b1.reshape(-1), (0, hp - hidden))
    w2p = jnp.pad(w2, ((0, hp - hidden), (0, 0)))

    # Transposed (feature-major) layout: batch is the last (lane) axis.
    xt = jnp.pad(x.T, ((0, 0), (0, Bp - B)))                    # (in_dim, Bp)
    w1t = w1p.T                                                 # (hp, in_dim)
    b1c = b1p.reshape(hp, 1)                                    # (hp, 1)
    w2t = w2p.T                                                 # (out_dim, hp)
    b2c = b2.reshape(out_dim, 1)                                # (out_dim, 1)

    def const(shape):
        # Constant index_map -> block stays resident in VMEM across grid steps.
        return pl.BlockSpec(shape, lambda i: (0,) * len(shape))

    out_t = pl.pallas_call(
        dpolicy_kernel,
        out_shape=jax.ShapeDtypeStruct((out_dim, Bp), jnp.float32),
        grid=(Bp // tb,),
        in_specs=[
            pl.BlockSpec((in_dim, tb), lambda i: (0, i)),       # streamed x tile
            const((hp, in_dim)),                                # resident weights
            const((hp, 1)),
            const((out_dim, hp)),
            const((out_dim, 1)),
        ],
        out_specs=pl.BlockSpec((out_dim, tb), lambda i: (0, i)),
        compiler_params=pltpu.CompilerParams(
            dimension_semantics=("parallel",),                  # megacore on v7x
        ),
    )(xt, w1t, b1c, w2t, b2c)

    # Drop batch padding and return in the module's (B, out_dim) layout.
    return out_t[:, :B].T


def init_params(key, input_dim=2, hidden=100, output_dim=1):
    """Deterministic synthetic parameters (shapes match the nn.Module)."""
    k1, k2, k3, k4 = jax.random.split(key, 4)
    s1 = 1.0 / jnp.sqrt(jnp.float32(input_dim))
    s2 = 1.0 / jnp.sqrt(jnp.float32(hidden))
    w1 = jax.random.uniform(k1, (input_dim, hidden), jnp.float32, -s1, s1)
    b1 = jax.random.uniform(k2, (hidden,), jnp.float32, -s1, s1)
    w2 = jax.random.uniform(k3, (hidden, output_dim), jnp.float32, -s2, s2)
    b2 = jax.random.uniform(k4, (output_dim,), jnp.float32, -s2, s2)
    return w1, b1, w2, b2


def _reference(x, w1, b1, w2, b2):
    h = jnp.maximum(x.astype(jnp.float32) @ w1 + b1[None, :], 0.0)
    return h @ w2 + b2[None, :]


if __name__ == "__main__":
    key = jax.random.PRNGKey(0)
    kx1, kx2, kp = jax.random.split(key, 3)

    input_dim, hidden, output_dim = 2, 100, 1
    w1, b1, w2, b2 = init_params(kp, input_dim, hidden, output_dim)

    # Small demo batch (exercises batch padding 8 -> 128, single grid step).
    x_small = jax.random.normal(kx1, (8, input_dim), jnp.float32)
    out_small = jax.block_until_ready(dpolicy_net(x_small, w1, b1, w2, b2))
    ref_small = _reference(x_small, w1, b1, w2, b2)
    assert out_small.shape == (8, output_dim)
    assert jnp.allclose(out_small, ref_small, atol=1e-5, rtol=1e-5)

    # Multi-tile batch (exercises the B grid + remainder slicing).
    x_big = jax.random.normal(kx2, (300, input_dim), jnp.float32)
    out_big = jax.block_until_ready(dpolicy_net(x_big, w1, b1, w2, b2, tile_b=128))
    ref_big = _reference(x_big, w1, b1, w2, b2)
    assert out_big.shape == (300, output_dim)
    assert jnp.allclose(out_big, ref_big, atol=1e-5, rtol=1e-5)

    print("KERNEL_OK")
</pallas_src>

<mosaic_0001>
module attributes {stable_mosaic.version = 11 : i64} {
  func.func @dpolicy_kernel(%arg0: i32, %arg1: memref<2x128xf32, #tpu.memory_space<vmem>>, %arg2: memref<128x2xf32, #tpu.memory_space<vmem>>, %arg3: memref<128x1xf32, #tpu.memory_space<vmem>>, %arg4: memref<1x128xf32, #tpu.memory_space<vmem>>, %arg5: memref<1x1xf32, #tpu.memory_space<vmem>>, %arg6: memref<1x128xf32, #tpu.memory_space<vmem>>) attributes {dimension_semantics = [#tpu.dimension_semantics<parallel>], iteration_bounds = array<i64: 1>, scalar_prefetch = 0 : i64, scratch_operands = 0 : i64, tpu.core_type = #tpu.core_type<tc>, window_params = [{transform_indices = @transform_0, window_bounds = array<i64: 2, 128>}, {pipeline_mode = #tpu.pipeline_mode<synchronous>, transform_indices = @transform_1, window_bounds = array<i64: 128, 2>}, {pipeline_mode = #tpu.pipeline_mode<synchronous>, transform_indices = @transform_2, window_bounds = array<i64: 128, 1>}, {pipeline_mode = #tpu.pipeline_mode<synchronous>, transform_indices = @transform_3, window_bounds = array<i64: 1, 128>}, {pipeline_mode = #tpu.pipeline_mode<synchronous>, transform_indices = @transform_4, window_bounds = array<i64: 1, 1>}, {transform_indices = @transform_5, window_bounds = array<i64: 1, 128>}]} {
    %c0 = arith.constant 0 : index
    %c0_0 = arith.constant 0 : index
    %0 = vector.load %arg1[%c0, %c0_0] : memref<2x128xf32, #tpu.memory_space<vmem>>, vector<2x128xf32>
    %c0_1 = arith.constant 0 : index
    %c0_2 = arith.constant 0 : index
    %1 = vector.load %arg2[%c0_1, %c0_2] : memref<128x2xf32, #tpu.memory_space<vmem>>, vector<128x2xf32>
    %cst = arith.constant dense<0.000000e+00> : vector<128x128xf32>
    %2 = tpu.matmul %1, %0, %cst {dimension_numbers = #tpu.dot_dimension_numbers<[1], [0], [0], [1], [0, 0, 1, 1], [], []>} : vector<128x2xf32>, vector<2x128xf32>, vector<128x128xf32> -> vector<128x128xf32>
    %c0_3 = arith.constant 0 : index
    %c0_4 = arith.constant 0 : index
    %3 = vector.load %arg3[%c0_3, %c0_4] : memref<128x1xf32, #tpu.memory_space<vmem>>, vector<128x1xf32>
    %4 = vector.broadcast %3 : vector<128x1xf32> to vector<128x128xf32>
    %5 = arith.addf %2, %4 : vector<128x128xf32>
    %cst_5 = arith.constant 0.000000e+00 : f32
    %6 = vector.broadcast %cst_5 : f32 to vector<128x128xf32>
    %7 = arith.maximumf %5, %6 : vector<128x128xf32>
    %c0_6 = arith.constant 0 : index
    %c0_7 = arith.constant 0 : index
    %8 = vector.load %arg4[%c0_6, %c0_7] : memref<1x128xf32, #tpu.memory_space<vmem>>, vector<1x128xf32>
    %cst_8 = arith.constant dense<0.000000e+00> : vector<1x128xf32>
    %9 = tpu.matmul %8, %7, %cst_8 {dimension_numbers = #tpu.dot_dimension_numbers<[1], [0], [0], [1], [0, 0, 1, 1], [], []>} : vector<1x128xf32>, vector<128x128xf32>, vector<1x128xf32> -> vector<1x128xf32>
    %c0_9 = arith.constant 0 : index
    %c0_10 = arith.constant 0 : index
    %10 = vector.load %arg5[%c0_9, %c0_10] : memref<1x1xf32, #tpu.memory_space<vmem>>, vector<1x1xf32>
    %11 = vector.broadcast %10 : vector<1x1xf32> to vector<1x128xf32>
    %12 = arith.addf %9, %11 : vector<1x128xf32>
    %c0_11 = arith.constant 0 : index
    %c0_12 = arith.constant 0 : index
    %13 = vector.load %arg6[%c0_11, %c0_12] : memref<1x128xf32, #tpu.memory_space<vmem>>, vector<1x128xf32>
    tpu.vector_store %arg6[%c0_11, %c0_12], %12 {strides = array<i32>} : memref<1x128xf32, #tpu.memory_space<vmem>>, vector<1x128xf32>,
    return
  }
  func.func @transform_0(%arg0: i32) -> (i32, i32) {
    %c0_i32 = arith.constant 0 : i32
    %c0_i32_0 = arith.constant 0 : i32
    return %c0_i32, %arg0 : i32, i32
  }
  func.func @transform_1(%arg0: i32) -> (i32, i32) {
    %c0_i32 = arith.constant 0 : i32
    %c0_i32_0 = arith.constant 0 : i32
    %c0_i32_1 = arith.constant 0 : i32
    return %c0_i32, %c0_i32_0 : i32, i32
  }
  func.func @transform_2(%arg0: i32) -> (i32, i32) {
    %c0_i32 = arith.constant 0 : i32
    %c0_i32_0 = arith.constant 0 : i32
    %c0_i32_1 = arith.constant 0 : i32
    return %c0_i32, %c0_i32_0 : i32, i32
  }
  func.func @transform_3(%arg0: i32) -> (i32, i32) {
    %c0_i32 = arith.constant 0 : i32
    %c0_i32_0 = arith.constant 0 : i32
    %c0_i32_1 = arith.constant 0 : i32
    return %c0_i32, %c0_i32_0 : i32, i32
  }
  func.func @transform_4(%arg0: i32) -> (i32, i32) {
    %c0_i32 = arith.constant 0 : i32
    %c0_i32_0 = arith.constant 0 : i32
    %c0_i32_1 = arith.constant 0 : i32
    return %c0_i32, %c0_i32_0 : i32, i32
  }
  func.func @transform_5(%arg0: i32) -> (i32, i32) {
    %c0_i32 = arith.constant 0 : i32
    %c0_i32_0 = arith.constant 0 : i32
    return %c0_i32, %arg0 : i32, i32
  }
}

</mosaic_0001>

<bundles_post_ra>
// kernel: dpolicy_net.1
= control target key start
LH: loop header
LB: loop body
LE: loop exit
PB: predicated region body
PF: predicated region fallthrough
CT: control target
= control target key end

     0   :  { %vm184_vm0 = vcmask 1041408   ;;  %vm135_vm1 = vcmask 15360   ;;  %v577_v3 = vmov 0   ;;  %v578_v36 = vmov 0.0|0.0   ;;  %s743_s0 = inlined_call_operand.vmem [shape: f32[2,128], index: 0, kind: input, shape index: {}]   ;;  %s744_s1 = inlined_call_operand.vmem [shape: f32[128,2], index: 1, kind: input, shape index: {}]   ;;  %s745_s4 = inlined_call_operand.<no memory space> [shape: f32[1,1], index: 4, kind: input, shape index: {}]   ;;  %s746_s2 = inlined_call_operand.vmem [shape: f32[128,1], index: 2, kind: input, shape index: {}]   ;;  %s747_s3 = inlined_call_operand.vmem [shape: f32[1,128], index: 3, kind: input, shape index: {}]   ;;  %s748_s5 = inlined_call_operand.vmem [shape: f32[1,128], index: 5, kind: output, shape index: {}]  }
   0x1   :  { %v22_v0 = vld [vmem:[%s743_s0] sm:$0x3]  ;;  %v24_v2 = vld [vmem:[%s744_s1 + $0x8] sm:$0xff]  ;;  %575 = vset.pattern.permute.xlu0 %v577_v3  ;;  %576 = vset.pattern.permute.xlu1 %v577_v3  ;;  %v10_v4 = vstv %s745_s4  ;;  %v25_v5 = vld [vmem:[%s744_s1 + $0x10] sm:$0xff]  ;;  %vm579_vm2 = vmmov 0   ;;  %v580_v37 = vmov 0.0  }
   0x2   :  { %v23_v1 = vld [vmem:[%s744_s1] sm:$0xff]  ;;  %486 = vmatprep.subr.msk.mxu0 %vm184_vm0, %v22_v0  ;;  %11 = vst [vmem:[#allocation2] sm:$0x1] %v10_v4  ;;  %v26_v6 = vld [vmem:[%s744_s1 + $0x18] sm:$0xff]  ;;  %v41_v9 = vld [vmem:[%s746_s2 + $0x10] sm:$0xff]  ;;  %547 = vmatprep.subr.bf16.mxu1 %v578_v36 }
   0x3   :  { %488 = vmatprep.mubr.msk.f32.mxu0 %vm135_vm1, %v23_v1  ;;  %487 = vmatpush3.msk.msra.mxu0 %vm184_vm0, %v22_v0  ;;  %v27_v7 = vld [vmem:[%s744_s1 + $0x20] sm:$0xff]  ;;  %v40_v10 = vld [vmem:[%s746_s2 + $0x8] sm:$0xff]  ;;  %v42_v12 = vld [vmem:[%s746_s2 + $0x18] sm:$0xff] }
   0x4   :  { %489 = vmatmul.mubr.msk.f32.vlgmr.msra.gmra.mrb[0].mxu0 %vm135_vm1, %v24_v2  ;;  %v39_v8 = vld [vmem:[%s746_s2] sm:$0xff]  ;;  %67 = vperm.xlu1 %576, %v41_v9   ;;  %v28_v11 = vld [vmem:[%s744_s1 + $0x28] sm:$0xff]  ;;  %v29_v13 = vld [vmem:[%s744_s1 + $0x30] sm:$0xff] }
   0x5   :  { %491 = vmatprep.mubr.msk.f32.mxu0 %vm135_vm1, %v25_v5  ;;  %57 = vperm.xlu0 %575, %v39_v8   ;;  %v43_v14 = vld [vmem:[%s746_s2 + $0x20] sm:$0xff]  ;;  %v30_v15 = vld [vmem:[%s744_s1 + $0x38] sm:$0xff]  ;;  %v44_v16 = vld [vmem:[%s746_s2 + $0x28] sm:$0xff] }
   0x6   :  { %v31_v17 = vld [vmem:[%s744_s1 + $0x40] sm:$0xff]  ;;  %v45_v18 = vld [vmem:[%s746_s2 + $0x30] sm:$0xff]  ;;  %v32_v19 = vld [vmem:[%s744_s1 + $0x48] sm:$0xff]  ;;  %544 = vmatprep.mubr.msk.f32.mxu1 %vm579_vm2, %v580_v37 }
   0x7   :  { %v46_v20 = vld [vmem:[%s746_s2 + $0x38] sm:$0xff]  ;;  %v33_v21 = vld [vmem:[%s744_s1 + $0x50] sm:$0xff]  ;;  %v47_v22 = vld [vmem:[%s746_s2 + $0x40] sm:$0xff] }
   0x8   :  { %492 = vmatmul.mubr.msk.f32.gmra.mrb[2].mxu0 %vm135_vm1, %v26_v6  ;;  %72 = vperm.xlu1 %576, %v42_v12   ;;  %v34_v23 = vld [vmem:[%s744_s1 + $0x58] sm:$0xff]  ;;  %v48_v24 = vld [vmem:[%s746_s2 + $0x48] sm:$0xff]  ;;  %v35_v25 = vld [vmem:[%s744_s1 + $0x60] sm:$0xff] }
   0x9   :  { %494 = vmatprep.mubr.msk.f32.mxu0 %vm135_vm1, %v27_v7  ;;  %62 = vperm.xlu0 %575, %v40_v10   ;;  %v49_v26 = vld [vmem:[%s746_s2 + $0x50] sm:$0xff]  ;;  %v36_v27 = vld [vmem:[%s744_s1 + $0x68] sm:$0xff]  ;;  %v50_v28 = vld [vmem:[%s746_s2 + $0x58] sm:$0xff] }
   0xa   :  { %v37_v29 = vld [vmem:[%s744_s1 + $0x70] sm:$0xff]  ;;  %v51_v30 = vld [vmem:[%s746_s2 + $0x60] sm:$0xff]  ;;  %v38_v31 = vld [vmem:[%s744_s1 + $0x78] sm:$0xff] }
   0xb   :  { %v52_v32 = vld [vmem:[%s746_s2 + $0x68] sm:$0xff]  ;;  %v53_v33 = vld [vmem:[%s746_s2 + $0x70] sm:$0xff]  ;;  %v54_v34 = vld [vmem:[%s746_s2 + $0x78] sm:$0xff] }
   0xc   :  { %495 = vmatmul.mubr.msk.f32.gmra.mrb[4].mxu0 %vm135_vm1, %v28_v11  ;;  %82 = vperm.xlu1 %576, %v44_v16   ;;  %v350_v35 = vld [vmem:[#allocation2] sm:$0x1] }
   0xd   :  { %497 = vmatprep.mubr.msk.f32.mxu0 %vm135_vm1, %v29_v13  ;;  %77 = vperm.xlu0 %575, %v43_v14  }
  0x10   :  { %498 = vmatmul.mubr.msk.f32.gmra.mrb[6].mxu0 %vm135_vm1, %v30_v15  ;;  %92 = vperm.xlu1 %576, %v46_v20  }
  0x11   :  { %500 = vmatprep.mubr.msk.f32.mxu0 %vm135_vm1, %v31_v17  ;;  %87 = vperm.xlu0 %575, %v45_v18  }
  0x14   :  { %501 = vmatmul.mubr.msk.f32.gmra.mrb[8].mxu0 %vm135_vm1, %v32_v19  ;;  %102 = vperm.xlu1 %576, %v48_v24  }
  0x15   :  { %503 = vmatprep.mubr.msk.f32.mxu0 %vm135_vm1, %v33_v21  ;;  %97 = vperm.xlu0 %575, %v47_v22  }
  0x18   :  { %504 = vmatmul.mubr.msk.f32.gmra.mrb[10].mxu0 %vm135_vm1, %v34_v23  ;;  %112 = vperm.xlu1 %576, %v50_v28  }
  0x19   :  { %506 = vmatprep.mubr.msk.f32.mxu0 %vm135_vm1, %v35_v25  ;;  %107 = vperm.xlu0 %575, %v49_v26  }
  0x1c   :  { %507 = vmatmul.mubr.msk.f32.gmra.mrb[12].mxu0 %vm135_vm1, %v36_v27  ;;  %122 = vperm.xlu1 %576, %v52_v32  }
  0x1d   :  { %509 = vmatprep.mubr.msk.f32.mxu0 %vm135_vm1, %v37_v29  ;;  %117 = vperm.xlu0 %575, %v51_v30  }
  0x20   :  { %510 = vmatmul.mubr.msk.f32.gmra.mrb[14].mxu0 %vm135_vm1, %v38_v31  ;;  %132 = vperm.xlu1 %576, %v54_v34  }
  0x21   :  { %127 = vperm.xlu0 %575, %v53_v33  }
  0x25   :  { %353 = vperm.xlu0 %575, %v350_v35  }
  0x83   :  { %v68_v38 = vpop.permute.xlu1 %67 }
  0x84   :  { %v58_v39 = vpop.permute.xlu0 %57 }
  0x87   :  { %v73_v40 = vpop.permute.xlu1 %72 }
  0x88   :  { %v63_v41 = vpop.permute.xlu0 %62 }
  0x8b   :  { %v83_v42 = vpop.permute.xlu1 %82 }
  0x8c   :  { %v78_v43 = vpop.permute.xlu0 %77 }
  0x8f   :  { %v93_v49 = vpop.permute.xlu1 %92 }
  0x90   :  { %v88_v52 = vpop.permute.xlu0 %87 }
  0x93   :  { %v103_v62 = vpop.permute.xlu1 %102 }
  0x94   :  { %v98_v1 = vpop.permute.xlu0 %97 }
  0x97   :  { %v113_v10 = vpop.permute.xlu1 %112 }
  0x98   :  { %v108_v13 = vpop.permute.xlu0 %107 }
  0x9b   :  { %v123_v23 = vpop.permute.xlu1 %122 }
  0x9c   :  { %v118_v26 = vpop.permute.xlu0 %117 }
  0x9f   :  { %v133_v35 = vpop.permute.xlu1 %132 }
  0xd7   :  { %v490_v44 = vpop.f32.mrb[0].mxu0 }
  0xd8   :  { %v260_v45 = vadd.f32 %v490_v44, %v63_v41  ;;  %v254_v46 = vpop.f32.mrb[1].mxu0 }
  0xd9   :  { %v255_v47 = vadd.f32 %v254_v46, %v58_v39  ;;  %v128_v39 = vpop.permute.xlu0 %127 }
  0xda   :  { %v334_v48 = vmax.f32 %v260_v45, 0.0 }
  0xdb   :  { %v333_v50 = vmax.f32 %v255_v47, 0.0  ;;  %v493_v51 = vpop.f32.mrb[2].mxu0  ;;  %v349_v47 = vld [vmem:[%s747_s3] sm:$0x1] }
  0xdc   :  { %v270_v53 = vadd.f32 %v493_v51, %v73_v40  ;;  %v264_v54 = vpop.f32.mrb[3].mxu0 }
  0xdd   :  { %v265_v55 = vadd.f32 %v264_v54, %v68_v38  ;;  %v548_v56 = vpack.c.bf16 %v334_v48, %v333_v50  ;;  %v356_v48 = vlaneseq  ;;  %v354_v51 = vpop.permute.xlu0 %353 }
  0xde   :  { %v336_v57 = vmax.f32 %v270_v53, 0.0 }
  0xdf   :  { %v335_v58 = vmax.f32 %v265_v55, 0.0  ;;  %v496_v59 = vpop.f32.mrb[4].mxu0  ;;  %549 = vmatpush3.bf16.msra.mxu1 %v548_v56 }
  0xe0   :  { %v280_v60 = vadd.f32 %v496_v59, %v83_v42  ;;  %v274_v61 = vpop.f32.mrb[5].mxu0  ;;  %550 = vmatprep.subr.bf16.mxu1 %v578_v36 }
  0xe1   :  { %v551_v63 = vpack.c.bf16 %v336_v57, %v335_v58  ;;  %v275_v0 = vadd.f32 %v274_v61, %v78_v43 }
  0xe2   :  { %v338_v2 = vmax.f32 %v280_v60, 0.0 }
  0xe3   :  { %v337_v3 = vmax.f32 %v275_v0, 0.0  ;;  %v499_v4 = vpop.f32.mrb[6].mxu0  ;;  %552 = vmatpush3.bf16.msra.mxu1 %v551_v63 }
  0xe4   :  { %v290_v5 = vadd.f32 %v499_v4, %v93_v49  ;;  %v284_v6 = vpop.f32.mrb[7].mxu0  ;;  %553 = vmatprep.subr.bf16.mxu1 %v578_v36  ;;  %v357_v49 = vshrl.u32 %v356_v48, 7 }
  0xe5   :  { %v554_v7 = vpack.c.bf16 %v338_v2, %v337_v3  ;;  %v285_v8 = vadd.f32 %v284_v6, %v88_v52 }
  0xe6   :  { %v340_v9 = vmax.f32 %v290_v5, 0.0  ;;  %v358_v50 = vsub.s32 0, %v357_v49 }
  0xe7   :  { %v339_v11 = vmax.f32 %v285_v8, 0.0  ;;  %v502_v12 = vpop.f32.mrb[8].mxu0  ;;  %555 = vmatpush3.bf16.msra.mxu1 %v554_v7 }
  0xe8   :  { %v300_v14 = vadd.f32 %v502_v12, %v103_v62  ;;  %v294_v15 = vpop.f32.mrb[9].mxu0  ;;  %556 = vmatprep.subr.bf16.mxu1 %v578_v36  ;;  %v359_v52 = vrot.slane %v354_v51, %v358_v50 }
  0xe9   :  { %v557_v16 = vpack.c.bf16 %v340_v9, %v339_v11  ;;  %v295_v17 = vadd.f32 %v294_v15, %v98_v1 }
  0xea   :  { %v342_v18 = vmax.f32 %v300_v14, 0.0 }
  0xeb   :  { %v341_v19 = vmax.f32 %v295_v17, 0.0  ;;  %v505_v20 = vpop.f32.mrb[10].mxu0  ;;  %558 = vmatpush3.bf16.msra.mxu1 %v557_v16 }
  0xec   :  { %v310_v21 = vadd.f32 %v505_v20, %v113_v10  ;;  %v304_v22 = vpop.f32.mrb[11].mxu0  ;;  %559 = vmatprep.subr.bf16.mxu1 %v578_v36 }
  0xed   :  { %v560_v24 = vpack.c.bf16 %v342_v18, %v341_v19  ;;  %v305_v25 = vadd.f32 %v304_v22, %v108_v13 }
  0xee   :  { %v344_v27 = vmax.f32 %v310_v21, 0.0 }
  0xef   :  { %v343_v28 = vmax.f32 %v305_v25, 0.0  ;;  %v508_v29 = vpop.f32.mrb[12].mxu0  ;;  %561 = vmatpush3.bf16.msra.mxu1 %v560_v24 }
  0xf0   :  { %v320_v30 = vadd.f32 %v508_v29, %v123_v23  ;;  %v314_v31 = vpop.f32.mrb[13].mxu0  ;;  %562 = vmatprep.subr.bf16.mxu1 %v578_v36 }
  0xf1   :  { %v563_v32 = vpack.c.bf16 %v344_v27, %v343_v28  ;;  %v315_v33 = vadd.f32 %v314_v31, %v118_v26 }
  0xf2   :  { %v346_v34 = vmax.f32 %v320_v30, 0.0 }
  0xf3   :  { %v345_v37 = vmax.f32 %v315_v33, 0.0  ;;  %v511_v38 = vpop.f32.mrb[14].mxu0  ;;  %564 = vmatpush3.bf16.msra.mxu1 %v563_v32 }
  0xf4   :  { %v330_v40 = vadd.f32 %v511_v38, %v133_v35  ;;  %v324_v41 = vpop.f32.mrb[15].mxu0  ;;  %565 = vmatprep.subr.bf16.mxu1 %v578_v36 }
  0xf5   :  { %v566_v42 = vpack.c.bf16 %v346_v34, %v345_v37  ;;  %v325_v43 = vadd.f32 %v324_v41, %v128_v39 }
  0xf6   :  { %v348_v44 = vmax.f32 %v330_v40, 0.0 }
  0xf7   :  { %v347_v45 = vmax.f32 %v325_v43, 0.0  ;;  %567 = vmatpush3.bf16.msra.mxu1 %v566_v42 }
  0xf8   :  { %568 = vmatprep.subr.bf16.mxu1 %v578_v36 }
  0xf9   :  { %v569_v46 = vpack.c.bf16 %v348_v44, %v347_v45 }
  0xfb   :  { %570 = vmatpush3.bf16.msra.mxu1 %v569_v46 }
  0xfe   :  { %545 = vmatmul.mubr.f32.vlgmr.msra.gmra.mrb[0].mxu1 %v349_v47 }
 0x1d1   :  { %v426_v53 = vpop.f32.mrb[0].mxu1 }
 0x1d2   :  { %v427_v54 = vadd.f32 %v426_v53, %v359_v52  ;;  %v546_v55 = vpop.f32.mrb[1].mxu1 }
 0x1d4   :  { %430 = vst [vmem:[%s748_s5] sm:$0x1] %v427_v54 }

</bundles_post_ra>
